<compile_context>
chip_gen: v7x
topology: tpu7x:2x2x1
jax: 0.10.0
libtpu: 0.0.40
codegen_flags: <defaults>
</compile_context>

<pallas_src>
import functools

import jax
import jax.numpy as jnp
from jax import lax
from jax.experimental import pallas as pl
from jax.experimental.pallas import tpu as pltpu


def _round_up(v, m):
    return ((v + m - 1) // m) * m


def _label_smoothing_kernel(x_ref, tgt_ref, out_ref, acc_ref, *,
                            smoothing: float, n_total: int, block_rows: int):
    pid = pl.program_id(0)

    @pl.when(pid == 0)
    def _init():
        acc_ref[...] = jnp.zeros_like(acc_ref)

    confidence = 1.0 - smoothing

    x = x_ref[...].astype(jnp.float32)                                # (TN, C)
    tn, c = x.shape

    # Per-row softmax statistics — never materialize logprobs.
    m = jnp.max(x, axis=-1, keepdims=True)                            # (TN, 1)
    lse = jnp.log(jnp.sum(jnp.exp(x - m), axis=-1, keepdims=True))    # (TN, 1)
    rowsum = jnp.sum(x, axis=-1, keepdims=True)                       # (TN, 1)

    # x[row, target[row]] via iota-compare + masked lane-sum (VPU/XLU only;
    # deliberately NOT an MXU one-hot matmul — this kernel is HBM-bound).
    col_ids = lax.broadcasted_iota(jnp.int32, (tn, c), 1)
    tgt = tgt_ref[...]                                                # (TN, 1)
    x_tgt = jnp.sum(jnp.where(col_ids == tgt, x, 0.0),
                    axis=-1, keepdims=True)                           # (TN, 1)

    # loss_row = confidence*nll + smoothing*smooth with logprobs eliminated.
    loss = (m + lse) - confidence * x_tgt - (smoothing / c) * rowsum  # (TN, 1)

    # Mask rows past the true batch size (padded tail tile).
    row_ids = pid * block_rows + lax.broadcasted_iota(jnp.int32, (tn, 1), 0)
    loss = jnp.where(row_ids < n_total, loss, 0.0)

    acc_ref[...] += jnp.sum(loss, keepdims=True)                      # (1, 1)

    @pl.when(pid == pl.num_programs(0) - 1)
    def _finalize():
        out_ref[...] = acc_ref[...] / jnp.float32(n_total)


def _choose_block_rows(n, c, itemsize):
    # Target ~6 MiB per logits tile so the double-buffered pipeline stays well
    # under the scoped-VMEM default on every generation (v5e/v6e/v7x).
    target_bytes = 6 * 1024 * 1024
    rows = target_bytes // max(c * itemsize, 1)
    rows = max(8, min(1024, (rows // 8) * 8))
    return min(rows, _round_up(n, 8))


def label_smoothing_loss(x, target, smoothing: float = 0.0, *, block_rows=None):
    """x: (N, C) float logits; target: (N,) int class ids. Returns scalar f32."""
    n, c = x.shape
    target2d = target.astype(jnp.int32).reshape(n, 1)

    if block_rows is None:
        block_rows = _choose_block_rows(n, c, x.dtype.itemsize)
    block_rows = max(8, _round_up(min(block_rows, _round_up(n, 8)), 8))

    # Pad the batch to a sublane multiple so every block is a legal (8k, C)
    # tile; padded rows are masked inside the kernel (mean uses the true n).
    n_pad = _round_up(n, 8)
    if n_pad != n:
        x = jnp.pad(x, ((0, n_pad - n), (0, 0)))
        target2d = jnp.pad(target2d, ((0, n_pad - n), (0, 0)))

    num_tiles = pl.cdiv(n_pad, block_rows)
    block_bytes = block_rows * c * x.dtype.itemsize
    vmem_limit = int(min(48 * 1024 * 1024,
                         max(32 * 1024 * 1024, 4 * block_bytes)))

    kernel = functools.partial(_label_smoothing_kernel,
                               smoothing=float(smoothing),
                               n_total=n, block_rows=block_rows)

    out = pl.pallas_call(
        kernel,
        out_shape=jax.ShapeDtypeStruct((1, 1), jnp.float32),
        grid_spec=pltpu.PrefetchScalarGridSpec(
            num_scalar_prefetch=0,
            grid=(num_tiles,),
            in_specs=[
                pl.BlockSpec((block_rows, c), lambda i: (i, 0)),   # logits tile
                pl.BlockSpec((block_rows, 1), lambda i: (i, 0)),   # target ids
            ],
            out_specs=pl.BlockSpec((1, 1), lambda i: (0, 0)),
            scratch_shapes=[pltpu.VMEM((1, 1), jnp.float32)],
        ),
        compiler_params=pltpu.CompilerParams(
            dimension_semantics=("arbitrary",),   # serial accumulation axis
            vmem_limit_bytes=vmem_limit,
        ),
    )(x, target2d)
    return out[0, 0]


def _reference(x, target, smoothing):
    # Pure-JAX reference mirroring the PyTorch module.
    confidence = 1.0 - smoothing
    logprobs = jax.nn.log_softmax(x.astype(jnp.float32), axis=-1)
    nll = -jnp.take_along_axis(logprobs, target[:, None], axis=-1)[:, 0]
    smooth = -jnp.mean(logprobs, axis=-1)
    return jnp.mean(confidence * nll + smoothing * smooth)


if __name__ == "__main__":
    key = jax.random.PRNGKey(0)
    kx, kt = jax.random.split(key)

    N, C = 20, 48            # small batch of logits over 48 classes
    smoothing = 0.1

    x = jax.random.normal(kx, (N, C), dtype=jnp.float32)
    target = jax.random.randint(kt, (N,), 0, C, dtype=jnp.int32)

    # Force a multi-tile grid (block_rows=8 -> 3 grid steps) so the
    # accumulator + padded-tail masking paths are exercised at demo size.
    loss = label_smoothing_loss(x, target, smoothing=smoothing, block_rows=8)
    loss = jax.block_until_ready(loss)

    ref = _reference(x, target, smoothing)
    assert jnp.allclose(loss, ref, atol=1e-5, rtol=1e-5), (loss, ref)

    print("KERNEL_OK")
</pallas_src>

<mosaic_0001>
module attributes {stable_mosaic.version = 11 : i64} {
  func.func @_label_smoothing_kernel(%arg0: i32, %arg1: memref<8x48xf32, #tpu.memory_space<vmem>>, %arg2: memref<8x1xi32, #tpu.memory_space<vmem>>, %arg3: memref<1x1xf32, #tpu.memory_space<vmem>>, %arg4: memref<1x1xf32, #tpu.memory_space<vmem>>) attributes {dimension_semantics = [#tpu.dimension_semantics<arbitrary>], iteration_bounds = array<i64: 3>, scalar_prefetch = 0 : i64, scratch_operands = 1 : i64, tpu.core_type = #tpu.core_type<tc>, window_params = [{transform_indices = @transform_0, window_bounds = array<i64: 8, 48>}, {transform_indices = @transform_1, window_bounds = array<i64: 8, 1>}, {pipeline_mode = #tpu.pipeline_mode<synchronous>, transform_indices = @transform_2, window_bounds = array<i64: 1, 1>}]} {
    %c0_i32 = arith.constant 0 : i32
    %0 = arith.cmpi eq, %arg0, %c0_i32 : i32
    %1 = arith.extui %0 : i1 to i32
    %c0_i32_0 = arith.constant 0 : i32
    %2 = arith.cmpi ne, %1, %c0_i32_0 : i32
    scf.if %2 {
      %cst_17 = arith.constant 0.000000e+00 : f32
      %48 = vector.broadcast %cst_17 : f32 to vector<1x1xf32>
      %c0_18 = arith.constant 0 : index
      %c0_19 = arith.constant 0 : index
      %49 = vector.load %arg4[%c0_18, %c0_19] : memref<1x1xf32, #tpu.memory_space<vmem>>, vector<1x1xf32>
      tpu.vector_store %arg4[%c0_18, %c0_19], %48 {strides = array<i32>} : memref<1x1xf32, #tpu.memory_space<vmem>>, vector<1x1xf32>,
    } else {
    }
    %c0 = arith.constant 0 : index
    %c0_1 = arith.constant 0 : index
    %3 = vector.load %arg1[%c0, %c0_1] : memref<8x48xf32, #tpu.memory_space<vmem>>, vector<8x48xf32>
    %cst = arith.constant dense<0xFF800000> : vector<8xf32>
    %4 = vector.multi_reduction <maximumf>, %3, %cst [1] : vector<8x48xf32> to vector<8xf32>
    %5 = vector.shape_cast %4 : vector<8xf32> to vector<8x1xf32>
    %6 = vector.broadcast %5 : vector<8x1xf32> to vector<8x48xf32>
    %7 = arith.subf %3, %6 : vector<8x48xf32>
    %8 = math.exp %7 : vector<8x48xf32>
    %cst_2 = arith.constant dense<0.000000e+00> : vector<8xf32>
    %9 = vector.multi_reduction <add>, %8, %cst_2 [1] : vector<8x48xf32> to vector<8xf32>
    %10 = vector.shape_cast %9 : vector<8xf32> to vector<8x1xf32>
    %11 = math.log %10 : vector<8x1xf32>
    %cst_3 = arith.constant dense<0.000000e+00> : vector<8xf32>
    %12 = vector.multi_reduction <add>, %3, %cst_3 [1] : vector<8x48xf32> to vector<8xf32>
    %13 = vector.shape_cast %12 : vector<8xf32> to vector<8x1xf32>
    %14 = tpu.iota {dimensions = array<i32: 1>} : vector<8x48xi32>
    %c0_4 = arith.constant 0 : index
    %c0_5 = arith.constant 0 : index
    %15 = vector.load %arg2[%c0_4, %c0_5] : memref<8x1xi32, #tpu.memory_space<vmem>>, vector<8x1xi32>
    %16 = vector.broadcast %15 : vector<8x1xi32> to vector<8x48xi32>
    %17 = arith.cmpi eq, %14, %16 : vector<8x48xi32>
    %cst_6 = arith.constant 0.000000e+00 : f32
    %18 = vector.broadcast %cst_6 : f32 to vector<8x48xf32>
    %19 = arith.select %17, %3, %18 : vector<8x48xi1>, vector<8x48xf32>
    %cst_7 = arith.constant dense<0.000000e+00> : vector<8xf32>
    %20 = vector.multi_reduction <add>, %19, %cst_7 [1] : vector<8x48xf32> to vector<8xf32>
    %21 = vector.shape_cast %20 : vector<8xf32> to vector<8x1xf32>
    %22 = arith.addf %5, %11 : vector<8x1xf32>
    %cst_8 = arith.constant 0.899999976 : f32
    %23 = vector.broadcast %cst_8 : f32 to vector<8x1xf32>
    %24 = arith.mulf %23, %21 : vector<8x1xf32>
    %25 = arith.subf %22, %24 : vector<8x1xf32>
    %cst_9 = arith.constant 0.00208333344 : f32
    %26 = vector.broadcast %cst_9 : f32 to vector<8x1xf32>
    %27 = arith.mulf %26, %13 : vector<8x1xf32>
    %28 = arith.subf %25, %27 : vector<8x1xf32>
    %c8_i32 = arith.constant 8 : i32
    %29 = arith.muli %arg0, %c8_i32 : i32
    %30 = tpu.iota {dimensions = array<i32: 0>} : vector<8x1xi32>
    %31 = vector.broadcast %29 : i32 to vector<8x1xi32>
    %32 = arith.addi %31, %30 : vector<8x1xi32>
    %c20_i32 = arith.constant 20 : i32
    %33 = vector.broadcast %c20_i32 : i32 to vector<8x1xi32>
    %34 = arith.cmpi slt, %32, %33 : vector<8x1xi32>
    %cst_10 = arith.constant 0.000000e+00 : f32
    %35 = vector.broadcast %cst_10 : f32 to vector<8x1xf32>
    %36 = arith.select %34, %28, %35 : vector<8x1xi1>, vector<8x1xf32>
    %c0_11 = arith.constant 0 : index
    %c0_12 = arith.constant 0 : index
    %37 = vector.load %arg4[%c0_11, %c0_12] : memref<1x1xf32, #tpu.memory_space<vmem>>, vector<1x1xf32>
    %38 = vector.shape_cast %36 : vector<8x1xf32> to vector<1x8x1xf32>
    %cst_13 = arith.constant dense<0.000000e+00> : vector<1xf32>
    %39 = vector.multi_reduction <add>, %38, %cst_13 [1, 2] : vector<1x8x1xf32> to vector<1xf32>
    %40 = vector.shape_cast %39 : vector<1xf32> to vector<1x1x1xf32>
    %41 = vector.extract %40[0, 0, 0] : f32 from vector<1x1x1xf32>
    %42 = vector.broadcast %41 : f32 to vector<1x1xf32>
    %43 = arith.addf %37, %42 : vector<1x1xf32>
    %c0_14 = arith.constant 0 : index
    %c0_15 = arith.constant 0 : index
    %44 = vector.load %arg4[%c0_14, %c0_15] : memref<1x1xf32, #tpu.memory_space<vmem>>, vector<1x1xf32>
    tpu.vector_store %arg4[%c0_14, %c0_15], %43 {strides = array<i32>} : memref<1x1xf32, #tpu.memory_space<vmem>>, vector<1x1xf32>,
    %c2_i32 = arith.constant 2 : i32
    %45 = arith.cmpi eq, %arg0, %c2_i32 : i32
    %46 = arith.extui %45 : i1 to i32
    %c0_i32_16 = arith.constant 0 : i32
    %47 = arith.cmpi ne, %46, %c0_i32_16 : i32
    scf.if %47 {
      %c0_17 = arith.constant 0 : index
      %c0_18 = arith.constant 0 : index
      %48 = vector.load %arg4[%c0_17, %c0_18] : memref<1x1xf32, #tpu.memory_space<vmem>>, vector<1x1xf32>
      %cst_19 = arith.constant 2.000000e+01 : f32
      %49 = vector.broadcast %cst_19 : f32 to vector<1x1xf32>
      %50 = arith.divf %48, %49 : vector<1x1xf32>
      %c0_20 = arith.constant 0 : index
      %c0_21 = arith.constant 0 : index
      %51 = vector.load %arg3[%c0_20, %c0_21] : memref<1x1xf32, #tpu.memory_space<vmem>>, vector<1x1xf32>
      tpu.vector_store %arg3[%c0_20, %c0_21], %50 {strides = array<i32>} : memref<1x1xf32, #tpu.memory_space<vmem>>, vector<1x1xf32>,
    } else {
    }
    return
  }
  func.func @transform_0(%arg0: i32) -> (i32, i32) {
    %c0_i32 = arith.constant 0 : i32
    %c0_i32_0 = arith.constant 0 : i32
    return %arg0, %c0_i32 : i32, i32
  }
  func.func @transform_1(%arg0: i32) -> (i32, i32) {
    %c0_i32 = arith.constant 0 : i32
    %c0_i32_0 = arith.constant 0 : i32
    return %arg0, %c0_i32 : i32, i32
  }
  func.func @transform_2(%arg0: i32) -> (i32, i32) {
    %c0_i32 = arith.constant 0 : i32
    %c0_i32_0 = arith.constant 0 : i32
    %c0_i32_1 = arith.constant 0 : i32
    return %c0_i32, %c0_i32_0 : i32, i32
  }
}

</mosaic_0001>

<bundles_post_ra>
// kernel: tpu_custom_call.1
= control target key start
LH: loop header
LB: loop body
LE: loop exit
PB: predicated region body
PF: predicated region fallthrough
CT: control target
= control target key end

     0   :  { %7 = vsyncpa [#allocation4], 0  ;;  %s364_s9 = smov 0   ;;  %s415_s0 = inlined_call_operand.vmem [shape: f32[24,48], index: 0, kind: input, shape index: {}]   ;;  %s416_s1 = inlined_call_operand.vmem [shape: s32[24,1], index: 1, kind: input, shape index: {}]   ;;  %s417_s2 = inlined_call_operand.hbm [shape: f32[1,1], index: 2, kind: output, shape index: {}]  }
   0x1 LB: > { %s370_s10 = sadd.s32 4294967295, %s344_s9   ;;  %p274_p0 = scmp.ge.s32.totalorder %s344_s9, 1  ;;  %s344_s9 = sphi %s364_s9, %s13_s9  }
   0x2   : > { %p116_p1 = scmp.lt.s32.totalorder %s344_s9, 4 }
   0x4   : > { %p117_p2 = pnand %p274_p0, %p116_p1 }
   0x5   : > { %p136_p3 = scmp.lt.s32.totalorder (!%p117_p2), %s370_s10, 2  ;;  %p277_p4 = scmp.ne.s32.totalorder (!%p117_p2), %s370_s10, 0 }
   0x6   : > { %120 = sbr.rel (%p117_p2) target bundleno = 587 (0x24b), region = 28 }
   0xd   : > { %s137_s11 = scalar_select %p136_p3, %s370_s10, 2 }
   0xe   : > { %147 = sbr.rel (%p277_p4) target bundleno = 21 (0x15), region = 32  ;;  %vm148_vm0 = vcmask (!%p277_p4), 0   ;;  %v346_v0 = vmov (!%p277_p4), 0.0  }
   0xf   : > { %s275_s12 = sshll.u32 %s137_s11, 3  ;;  %149 = vst.msk [vmem:[#allocation2] sm:$0x1] (!%p277_p4), %vm148_vm0, %v346_v0 }
  0x10   : > { %s139_s15 = scalar_lea.vmem %s415_s0, %s275_s12  ;;  %s143_s18 = scalar_lea.vmem %s416_s1, %s275_s12 }
  0x15 PF: > { %v150_v1 = vld [vmem:[%s139_s15] sm:$0xff]  ;;  %vm151_vm1 = vcmask 392192   ;;  %v347_v3 = vmov 0   ;;  %v166_v8 = vlaneseq  ;;  %s278_s19 = sshll.u32 %s370_s10, 3  ;;  %vm190_vm4 = vcmask 7168   ;;  %p279_p5 = scmp.ne.s32.totalorder %s370_s10, 2 }
  0x16   : > { %v152_v2 = vsel %vm151_vm1, %v150_v1, -inf  ;;  %303 = vset.pattern.permute.xlu0 %v347_v3  ;;  %v168_v4 = vld [vmem:[%s143_s18] sm:$0xff]  ;;  %v163_v15 = vsel %vm151_vm1, %v150_v1, 0.0  ;;  %v185_v19 = vstv %s278_s19  ;;  %vm203_vm5 = vcmask 0  }
  0x17   : > { %153 = vmax.xlane.f32.xlu0 %v152_v2  ;;  %v167_v9 = vand.u32 127, %v166_v8  ;;  %v184_v18 = vshrl.u32 %v166_v8, 7  ;;  %v189_v38 = vld [vmem:[#allocation2] sm:$0x1] }
  0x19   : > { %v186_v23 = vadd.s32 %v185_v19, %v184_v18 }
  0x1b   : > { %vm187_vm3 = vcmp.lt.s32.totalorder %v186_v23, 20 }
  0x2d   : > { %170 = vperm.xlu0 %303, %v168_v4  }
  0xa4   : > { %v154_v5 = vpop.xlane.xlu0 %153 }
  0xa5   : > { %v155_v6 = vsub.f32 %v150_v1, %v154_v5 }
  0xa7   : > { %v156_v7 = vmul.f32 1.442695, %v155_v6 }
  0xa9   : > { %304 = vpow2.f32 %v156_v7 }
  0xac   : > { %v171_v10 = vpop.permute.xlu0 %170 }
  0xad   : > { %vm172_vm2 = vcmp.eq.s32.totalorder %v167_v9, %v171_v10 }
  0xae   : > { %v173_v12 = vsel %vm172_vm2, %v150_v1, 0.0 }
  0xaf   : > { %v174_v14 = vsel %vm151_vm1, %v173_v12, 0.0 }
  0xb3   : > { %v305_v11 = vpop.eup %304 }
  0xb4   : > { %v158_v13 = vsel %vm151_vm1, %v305_v11, 0.0 }
  0xb5   : > { %159 = vadd.xlane.f32.xlu1 %v158_v13 }
  0xb9   : > { %175 = vadd.xlane.f32.xlu1 %v174_v14 }
  0xbd   : > { %164 = vadd.xlane.f32.xlu1 %v163_v15 }
 0x142   : > { %v160_v16 = vpop.xlane.xlu1 %159 }
 0x143   : > { %306 = vlog2.f32 %v160_v16 }
 0x146   : > { %v176_v17 = vpop.xlane.xlu1 %175 }
 0x147   : > { %v178_v25 = vmul.f32 0.9, %v176_v17 }
 0x14a   : > { %v165_v21 = vpop.xlane.xlu1 %164 }
 0x14b   : > { %v180_v26 = vmul.f32 0.0020833334, %v165_v21 }
 0x14d   : > { %v307_v20 = vpop.eup %306 }
 0x14e   : > { %v162_v22 = vmul.f32 0.6931472, %v307_v20 }
 0x150   : > { %v177_v24 = vadd.f32 %v162_v22, %v154_v5 }
 0x152   : > { %v179_v27 = vsub.f32 %v177_v24, %v178_v25 }
 0x154   : > { %v181_v28 = vsub.f32 %v179_v27, %v180_v26 }
 0x156   : > { %v188_v29 = vsel %vm187_vm3, %v181_v28, 0.0 }
 0x157   : > { %v191_v30 = vsel %vm190_vm4, %v188_v29, 0.0 }
 0x158   : > { %192 = vadd.xlane.f32.xlu1 %v191_v30 }
 0x1e5   : > { %v193_v31 = vpop.xlane.xlu1 %192 }
 0x1e6   : > { %v194_v32 = vrot.slane %v193_v31, 4 }
 0x1e8   : > { %v195_v33 = vadd.f32 %v194_v32, %v193_v31 }
 0x1ea   : > { %v196_v34 = vrot.slane %v195_v33, 2 }
 0x1ec   : > { %v197_v35 = vadd.f32 %v196_v34, %v195_v33 }
 0x1ee   : > { %v198_v36 = vrot.slane %v197_v35, 1 }
 0x1f0   : > { %v199_v37 = vadd.f32 %v198_v36, %v197_v35 }
 0x1f2   : > { %284 = vpush %v199_v37 }
 0x221   : > { %208 = sbr.rel (%p279_p5) target bundleno = 562 (0x232), region = 36 }
 0x223   : > { %s285_s20 = spop %284 }
 0x224   : > { %v201_v39 = vstv %s285_s20 }
 0x225   : > { %v202_v40 = vadd.f32 %v201_v39, %v189_v38 }
 0x227   : > { %204 = vst.msk [vmem:[#allocation2] sm:$0x1] %vm203_vm5, %v202_v40 }
 0x22e   : > { %v209_v41 = vld [vmem:[#allocation2] sm:$0x1] }
 0x22f   : > { %v211_v42 = vmul.f32 0.05, %v209_v41 }
 0x231   : > { %212 = vst.msk [vmem:[#allocation3] sm:$0x1] %vm203_vm5, %v211_v42 }
 0x232 PF: > { %p290_p6 = scmp.eq.s32.totalorder %s370_s10, 2  ;;  %s348_s21 = smov [#allocation3]  }
 0x233   : > { %s220_s22 = sshll.u32 %s348_s21, 4  ;;  %s221_s22 = int_to_ptr.vmem [resolvable:$true] %s220_s22 }
 0x234   : > { %s308_s23 = scalar_lea.vmem %s221_s22, 16  ;;  %s314_s24 = scalar_lea.vmem %s221_s22, 32 }
 0x235   : > { %p309_p7 = scmp.ne.s32.totalorder %s221_s22, %s308_s23  ;;  %p315_p10 = scmp.lt.s32.totalorder %s221_s22, %s221_s22 }
 0x236   : > { %p316_p11 = scmp.lt.s32.totalorder %s314_s24, %s308_s23 }
 0x237   : > { %p310_p8 = pnand %p309_p7, %p290_p6 }
 0x238   : > { %p317_p12 = por %p316_p11, %p315_p10 }
 0x239   : > { %p311_p9 = pneg %p310_p8 }
 0x23b   : > { %p318_p13 = pnand %p317_p12, %p311_p9 }
 0x23d   : > { %321 = shalt.err (!%p318_p13)
}
 0x23e   : > { %s322_s27 = scalar_lea.hbm %s417_s2, 16 }
 0x23f   : > { %p323_p0 = scmp.ne.s32.totalorder %s417_s2, %s322_s27  ;;  %p328_p3 = scmp.lt.u32.totalorder %s322_s27, %s417_s2 }
 0x241   : > { %p324_p1 = pnand %p323_p0, %p290_p6 }
 0x243   : > { %p325_p2 = pneg %p324_p1 }
 0x245   : > { %p330_p4 = pnand %p328_p3, %p325_p2 }
 0x247   : > { %333 = shalt.err (!%p330_p4)
}
 0x248   : > { %287 = dma.vmem_to_hbm [thread:$0]  (%p290_p6), %s221_s22, 16, %s417_s2, [#allocation4]  }
 0x249   : > { %339 = dma.done.wait (%p290_p6), [#allocation4], 16  }
 0x24a   : > { %341 = vsyncadd (%p290_p6), [#allocation4], 4294967280 }
 0x24b PF: > { %s13_s9 = sadd.s32 1, %s344_s9  }
 0x24c   : > { %p10_p5 = scmp.ge.s32.totalorder %s13_s9, 5  }
 0x24e   :  { %12 = sbr.rel (!%p10_p5) target bundleno = 1 (0x1), region = 66 }
 0x255   :  { %233 = vsyncpa [#allocation4], 1 }
 0x256   :  { %235 = vsyncpa [#allocation4 + $0x1], 1 }

</bundles_post_ra>
